<compile_context>
chip_gen: v7x
topology: tpu7x:2x2x1
jax: 0.10.0
libtpu: 0.0.40
codegen_flags: <defaults>
</compile_context>

<pallas_src>
import jax
import jax.numpy as jnp
from jax.experimental import pallas as pl
from jax.experimental.pallas import tpu as pltpu


# ---------------------------------------------------------------------------
# Model hyper-parameters (small, consistent with the module's forward)
# ---------------------------------------------------------------------------
B, C_IN, H, W = 2, 4, 16, 16        # input (NCHW): (2, 4, 16, 16)
C_OUT = 32                          # backbone channels
FEAT_DIMS = 64                      # base_model.feat_dims_l4
KH = KW = 3                         # conv kernel
BN_EPS = 1e-5

HW = H * W
K_IM2COL = KH * KW * C_IN           # 36

# Lane-dense padded dims (everything the MXU / vst touches is a multiple of 128)
K_PAD = 128                         # im2col depth  36 -> 128
C_PAD = 128                         # conv channels 32 -> 128
F_PAD = 128                         # embedding dim 64 -> 128


# ---------------------------------------------------------------------------
# Pallas kernel: per-batch fused  conv(im2col matmul) + bias + ReLU
#                                 -> GAP (in-register) -> FC head
# Grid = (B,), "parallel" -> each step handles one image's HW rows.
# ---------------------------------------------------------------------------
def encoder_kernel(patches_ref, wconv_ref, bconv_ref, wfc_ref, bfc_ref,
                   f_ref, emb_ref):
    # patches_ref : (HW, K_PAD)   bf16  im2col patches for this image
    # wconv_ref   : (K_PAD, C_PAD) bf16 BN-folded conv weights (zero-padded)
    # bconv_ref   : (1, C_PAD)    f32   BN-folded conv bias    (zero-padded)
    # wfc_ref     : (C_PAD, F_PAD) bf16 FC head weights        (zero-padded)
    # bfc_ref     : (1, F_PAD)    f32   FC head bias           (zero-padded)
    # f_ref       : (HW, C_PAD)   f32   backbone feature map (lane-dense slab)
    # emb_ref     : (1, 1, F_PAD) f32   embedding for this image

    # Conv3x3 + folded BN as one full-K, full-N MXU matmul; f32 epilogue.
    feat = jnp.dot(patches_ref[...], wconv_ref[...],
                   preferred_element_type=jnp.float32)       # (HW, C_PAD) f32
    feat = jnp.maximum(feat + bconv_ref[...], 0.0)           # bias + ReLU
    f_ref[...] = feat                                        # unmasked vst

    # Global average pool over this image's HW rows, straight from the
    # register-resident `feat` (no HBM re-read, no O(B^2) pooling matrix).
    pooled = jnp.mean(feat, axis=0, keepdims=True)           # (1, C_PAD) f32

    # FC head on the MXU (bf16 weights, f32 accumulate), bias once.
    emb = jnp.dot(pooled.astype(jnp.bfloat16), wfc_ref[...],
                  preferred_element_type=jnp.float32) + bfc_ref[...]
    emb_ref[...] = emb.reshape(emb_ref.shape)


def encoder_forward(x_nchw, params):
    """x_nchw: (B, C_IN, H, W) float32.  Returns (embedding, feature_map_nchw)."""
    wconv, bconv, wfc, bfc = (params["wconv"], params["bconv"],
                              params["wfc"], params["bfc"])

    # --- wrapper glue: NCHW -> NHWC, pad, im2col, zero-pad to lane shapes ---
    # TODO(synk): at production H/W/B, build the im2col taps in-kernel from a
    # VMEM-resident padded activation tile (pl.ds shifted views) instead of
    # materializing the 9x-amplified patch matrix in XLA, and tile the HW axis
    # (512-1024 rows) with a pl.when-accumulated pooled scratch.
    x_nhwc = jnp.transpose(x_nchw, (0, 2, 3, 1))
    x_pad = jnp.pad(x_nhwc, ((0, 0), (1, 1), (1, 1), (0, 0)))
    # Taps stacked in (ky, kx) order with C_IN innermost, matching
    # wconv.reshape(KH*KW*C_IN, C_OUT) row-major flattening.
    taps = [x_pad[:, ky:ky + H, kx:kx + W, :]
            for ky in range(KH) for kx in range(KW)]
    patches = jnp.stack(taps, axis=3).reshape(B * HW, K_IM2COL)
    patches = jnp.pad(patches, ((0, 0), (0, K_PAD - K_IM2COL)))
    patches = patches.astype(jnp.bfloat16)                    # (B*HW, 128) bf16

    w_conv_p = jnp.pad(wconv.reshape(K_IM2COL, C_OUT),
                       ((0, K_PAD - K_IM2COL), (0, C_PAD - C_OUT)))
    w_conv_p = w_conv_p.astype(jnp.bfloat16)                  # (128, 128) bf16
    b_conv_p = jnp.pad(bconv, ((0, 0), (0, C_PAD - C_OUT)))   # (1, 128)  f32

    w_fc_p = jnp.pad(wfc, ((0, C_PAD - C_OUT), (0, F_PAD - FEAT_DIMS)))
    w_fc_p = w_fc_p.astype(jnp.bfloat16)                      # (128, 128) bf16
    b_fc_p = jnp.pad(bfc, ((0, 0), (0, F_PAD - FEAT_DIMS)))   # (1, 128)  f32

    cost = pl.CostEstimate(
        flops=2 * B * HW * K_PAD * C_PAD        # conv matmul
              + B * HW * C_PAD                  # GAP
              + 2 * B * C_PAD * F_PAD,          # FC head
        transcendentals=0,
        bytes_accessed=(patches.size * 2 + w_conv_p.size * 2 + w_fc_p.size * 2
                        + b_conv_p.size * 4 + b_fc_p.size * 4
                        + B * HW * C_PAD * 4 + B * F_PAD * 4),
    )

    vmem = pltpu.MemorySpace.VMEM
    f_flat, emb_p = pl.pallas_call(
        encoder_kernel,
        grid=(B,),
        in_specs=[
            pl.BlockSpec((HW, K_PAD), lambda b: (b, 0), memory_space=vmem),
            pl.BlockSpec((K_PAD, C_PAD), lambda b: (0, 0), memory_space=vmem),
            pl.BlockSpec((1, C_PAD), lambda b: (0, 0), memory_space=vmem),
            pl.BlockSpec((C_PAD, F_PAD), lambda b: (0, 0), memory_space=vmem),
            pl.BlockSpec((1, F_PAD), lambda b: (0, 0), memory_space=vmem),
        ],
        out_specs=(
            pl.BlockSpec((HW, C_PAD), lambda b: (b, 0), memory_space=vmem),
            pl.BlockSpec((1, 1, F_PAD), lambda b: (b, 0, 0), memory_space=vmem),
        ),
        out_shape=(
            jax.ShapeDtypeStruct((B * HW, C_PAD), jnp.float32),
            jax.ShapeDtypeStruct((B, 1, F_PAD), jnp.float32),
        ),
        compiler_params=pltpu.CompilerParams(
            dimension_semantics=("parallel",),
            vmem_limit_bytes=32 * 1024 * 1024),
        cost_estimate=cost,
    )(patches, w_conv_p, b_conv_p, w_fc_p, b_fc_p)

    # Slice the lane padding back off and restore NCHW.
    f_nhwc = f_flat[:, :C_OUT].reshape(B, H, W, C_OUT)
    f_nchw = jnp.transpose(f_nhwc, (0, 3, 1, 2))
    emb = emb_p[:, 0, :FEAT_DIMS]                              # (B, FEAT_DIMS)
    return emb, f_nchw


# ---------------------------------------------------------------------------
# Deterministic parameter init (synthetic base_model weights; BN folded)
# ---------------------------------------------------------------------------
def make_params():
    key = jax.random.PRNGKey(42)
    k_conv, k_gamma, k_beta, k_mean, k_var, k_fc, k_fcb = jax.random.split(key, 7)

    w_conv = jax.random.normal(k_conv, (KH, KW, C_IN, C_OUT), jnp.float32) * 0.1
    gamma = 1.0 + 0.05 * jax.random.normal(k_gamma, (C_OUT,), jnp.float32)
    beta = 0.05 * jax.random.normal(k_beta, (C_OUT,), jnp.float32)
    run_mean = 0.1 * jax.random.normal(k_mean, (C_OUT,), jnp.float32)
    run_var = jnp.abs(1.0 + 0.1 * jax.random.normal(k_var, (C_OUT,), jnp.float32))

    # Fold BatchNorm (inference mode) into the conv weights/bias.
    scale = gamma / jnp.sqrt(run_var + BN_EPS)                  # (C_OUT,)
    w_fold = w_conv * scale[None, None, None, :]
    b_fold = (beta - run_mean * scale)[None, :]                 # (1, C_OUT)

    w_fc = jax.random.normal(k_fc, (C_OUT, FEAT_DIMS), jnp.float32) * 0.1
    b_fc = 0.01 * jax.random.normal(k_fcb, (1, FEAT_DIMS), jnp.float32)

    return {"wconv": w_fold, "bconv": b_fold, "wfc": w_fc, "bfc": b_fc}


# ---------------------------------------------------------------------------
# Pure-JAX reference (f32) for verification
# ---------------------------------------------------------------------------
def reference_forward(x_nchw, params):
    x_nhwc = jnp.transpose(x_nchw, (0, 2, 3, 1))
    f = jax.lax.conv_general_dilated(
        x_nhwc, params["wconv"],
        window_strides=(1, 1), padding="SAME",
        dimension_numbers=("NHWC", "HWIO", "NHWC"))
    f = jnp.maximum(f + params["bconv"][0], 0.0)
    pooled = jnp.mean(f, axis=(1, 2))
    emb = pooled @ params["wfc"] + params["bfc"][0]
    return emb, jnp.transpose(f, (0, 3, 1, 2))


if __name__ == "__main__":
    params = make_params()
    x = jax.random.normal(jax.random.PRNGKey(0), (B, C_IN, H, W), jnp.float32)

    emb, f = encoder_forward(x, params)
    jax.block_until_ready((emb, f))

    emb_ref, f_ref = reference_forward(x, params)
    # bf16 MXU inputs (f32 accumulate) -> loosened tolerance vs. the f32 reference.
    assert jnp.allclose(emb, emb_ref, atol=3e-2, rtol=3e-2)
    assert jnp.allclose(f, f_ref, atol=3e-2, rtol=3e-2)

    print("KERNEL_OK")
</pallas_src>

<mosaic_0001>
module attributes {stable_mosaic.version = 11 : i64} {
  func.func @encoder_kernel(%arg0: i32, %arg1: memref<256x128xbf16, #tpu.memory_space<vmem>>, %arg2: memref<128x128xbf16, #tpu.memory_space<vmem>>, %arg3: memref<1x128xf32, #tpu.memory_space<vmem>>, %arg4: memref<128x128xbf16, #tpu.memory_space<vmem>>, %arg5: memref<1x128xf32, #tpu.memory_space<vmem>>, %arg6: memref<256x128xf32, #tpu.memory_space<vmem>>, %arg7: memref<1x1x128xf32, #tpu.memory_space<vmem>>) attributes {dimension_semantics = [#tpu.dimension_semantics<parallel>], iteration_bounds = array<i64: 2>, scalar_prefetch = 0 : i64, scratch_operands = 0 : i64, tpu.core_type = #tpu.core_type<tc>, window_params = [{transform_indices = @transform_0, window_bounds = array<i64: 256, 128>}, {pipeline_mode = #tpu.pipeline_mode<synchronous>, transform_indices = @transform_1, window_bounds = array<i64: 128, 128>}, {pipeline_mode = #tpu.pipeline_mode<synchronous>, transform_indices = @transform_2, window_bounds = array<i64: 1, 128>}, {pipeline_mode = #tpu.pipeline_mode<synchronous>, transform_indices = @transform_3, window_bounds = array<i64: 128, 128>}, {pipeline_mode = #tpu.pipeline_mode<synchronous>, transform_indices = @transform_4, window_bounds = array<i64: 1, 128>}, {transform_indices = @transform_5, window_bounds = array<i64: 256, 128>}, {transform_indices = @transform_6, window_bounds = array<i64: 1, 1, 128>}]} {
    %c0 = arith.constant 0 : index
    %c0_0 = arith.constant 0 : index
    %0 = vector.load %arg1[%c0, %c0_0] : memref<256x128xbf16, #tpu.memory_space<vmem>>, vector<256x128xbf16>
    %c0_1 = arith.constant 0 : index
    %c0_2 = arith.constant 0 : index
    %1 = vector.load %arg2[%c0_1, %c0_2] : memref<128x128xbf16, #tpu.memory_space<vmem>>, vector<128x128xbf16>
    %cst = arith.constant dense<0.000000e+00> : vector<256x128xf32>
    %2 = tpu.matmul %0, %1, %cst {dimension_numbers = #tpu.dot_dimension_numbers<[1], [0], [0], [1], [0, 0, 1, 1], [], []>} : vector<256x128xbf16>, vector<128x128xbf16>, vector<256x128xf32> -> vector<256x128xf32>
    %c0_3 = arith.constant 0 : index
    %c0_4 = arith.constant 0 : index
    %3 = vector.load %arg3[%c0_3, %c0_4] : memref<1x128xf32, #tpu.memory_space<vmem>>, vector<1x128xf32>
    %4 = vector.broadcast %3 : vector<1x128xf32> to vector<256x128xf32>
    %5 = arith.addf %2, %4 : vector<256x128xf32>
    %cst_5 = arith.constant 0.000000e+00 : f32
    %6 = vector.broadcast %cst_5 : f32 to vector<256x128xf32>
    %7 = arith.maximumf %5, %6 : vector<256x128xf32>
    %c0_6 = arith.constant 0 : index
    %c0_7 = arith.constant 0 : index
    %8 = vector.load %arg6[%c0_6, %c0_7] : memref<256x128xf32, #tpu.memory_space<vmem>>, vector<256x128xf32>
    tpu.vector_store %arg6[%c0_6, %c0_7], %7 {strides = array<i32>} : memref<256x128xf32, #tpu.memory_space<vmem>>, vector<256x128xf32>,
    %cst_8 = arith.constant dense<0.000000e+00> : vector<128xf32>
    %9 = vector.multi_reduction <add>, %7, %cst_8 [0] : vector<256x128xf32> to vector<128xf32>
    %10 = vector.shape_cast %9 : vector<128xf32> to vector<1x128xf32>
    %cst_9 = arith.constant 2.560000e+02 : f32
    %11 = vector.broadcast %cst_9 : f32 to vector<1x128xf32>
    %12 = arith.divf %10, %11 : vector<1x128xf32>
    %13 = arith.truncf %12 : vector<1x128xf32> to vector<1x128xbf16>
    %c0_10 = arith.constant 0 : index
    %c0_11 = arith.constant 0 : index
    %14 = vector.load %arg4[%c0_10, %c0_11] : memref<128x128xbf16, #tpu.memory_space<vmem>>, vector<128x128xbf16>
    %cst_12 = arith.constant dense<0.000000e+00> : vector<1x128xf32>
    %15 = tpu.matmul %13, %14, %cst_12 {dimension_numbers = #tpu.dot_dimension_numbers<[1], [0], [0], [1], [0, 0, 1, 1], [], []>} : vector<1x128xbf16>, vector<128x128xbf16>, vector<1x128xf32> -> vector<1x128xf32>
    %c0_13 = arith.constant 0 : index
    %c0_14 = arith.constant 0 : index
    %16 = vector.load %arg5[%c0_13, %c0_14] : memref<1x128xf32, #tpu.memory_space<vmem>>, vector<1x128xf32>
    %17 = arith.addf %15, %16 : vector<1x128xf32>
    %18 = vector.shape_cast %17 : vector<1x128xf32> to vector<1x1x128xf32>
    %c0_15 = arith.constant 0 : index
    %c0_16 = arith.constant 0 : index
    %c0_17 = arith.constant 0 : index
    %19 = vector.load %arg7[%c0_15, %c0_16, %c0_17] : memref<1x1x128xf32, #tpu.memory_space<vmem>>, vector<1x1x128xf32>
    tpu.vector_store %arg7[%c0_15, %c0_16, %c0_17], %18 {strides = array<i32>} : memref<1x1x128xf32, #tpu.memory_space<vmem>>, vector<1x1x128xf32>,
    return
  }
  func.func @transform_0(%arg0: i32) -> (i32, i32) {
    %c0_i32 = arith.constant 0 : i32
    %c0_i32_0 = arith.constant 0 : i32
    return %arg0, %c0_i32 : i32, i32
  }
  func.func @transform_1(%arg0: i32) -> (i32, i32) {
    %c0_i32 = arith.constant 0 : i32
    %c0_i32_0 = arith.constant 0 : i32
    %c0_i32_1 = arith.constant 0 : i32
    return %c0_i32, %c0_i32_0 : i32, i32
  }
  func.func @transform_2(%arg0: i32) -> (i32, i32) {
    %c0_i32 = arith.constant 0 : i32
    %c0_i32_0 = arith.constant 0 : i32
    %c0_i32_1 = arith.constant 0 : i32
    return %c0_i32, %c0_i32_0 : i32, i32
  }
  func.func @transform_3(%arg0: i32) -> (i32, i32) {
    %c0_i32 = arith.constant 0 : i32
    %c0_i32_0 = arith.constant 0 : i32
    %c0_i32_1 = arith.constant 0 : i32
    return %c0_i32, %c0_i32_0 : i32, i32
  }
  func.func @transform_4(%arg0: i32) -> (i32, i32) {
    %c0_i32 = arith.constant 0 : i32
    %c0_i32_0 = arith.constant 0 : i32
    %c0_i32_1 = arith.constant 0 : i32
    return %c0_i32, %c0_i32_0 : i32, i32
  }
  func.func @transform_5(%arg0: i32) -> (i32, i32) {
    %c0_i32 = arith.constant 0 : i32
    %c0_i32_0 = arith.constant 0 : i32
    return %arg0, %c0_i32 : i32, i32
  }
  func.func @transform_6(%arg0: i32) -> (i32, i32, i32) {
    %c0_i32 = arith.constant 0 : i32
    %c0_i32_0 = arith.constant 0 : i32
    %c0_i32_1 = arith.constant 0 : i32
    return %arg0, %c0_i32, %c0_i32_0 : i32, i32, i32
  }
}

</mosaic_0001>

<bundles_post_ra>
// kernel: tpu_custom_call.1
= control target key start
LH: loop header
LB: loop body
LE: loop exit
PB: predicated region body
PF: predicated region fallthrough
CT: control target
= control target key end

     0   :  { %12 = vsyncpa [#allocation3], 0  ;;  %s1902_s0 = inlined_call_operand.hbm [shape: bf16[512,128], index: 0, kind: input, shape index: {}]   ;;  %s1903_s1 = inlined_call_operand.hbm [shape: bf16[128,128], index: 1, kind: input, shape index: {}]   ;;  %s1904_s2 = inlined_call_operand.vmem [shape: f32[1,128], index: 2, kind: input, shape index: {}]   ;;  %s1905_s3 = inlined_call_operand.hbm [shape: bf16[128,128], index: 3, kind: input, shape index: {}]   ;;  %s1906_s4 = inlined_call_operand.vmem [shape: f32[1,128], index: 4, kind: input, shape index: {}]   ;;  %s1907_s5 = inlined_call_operand.hbm [shape: f32[512,128], index: 5, kind: output, shape index: {0}]   ;;  %s1908_s6 = inlined_call_operand.hbm [shape: f32[2,1,128], index: 6, kind: output, shape index: {1}]  }
   0x1   :  { %14 = vsyncpa [#allocation3 + $0x1], 0 }
   0x2   :  { %15 = vsyncpa [#allocation6], 0 }
   0x3   :  { %16 = vsyncpa [#allocation4], 0 }
   0x4   :  { %18 = vsyncpa [#allocation4 + $0x1], 0 }
   0x5   :  { %19 = vsyncpa [#allocation10], 0 }
   0x6   :  { %21 = vsyncpa [#allocation10 + $0x1], 0  ;;  %s1534_s21 = smov 0   ;;  %s1536_s22 = smov 0  }
   0x7   :  { %s1538_s23 = smov 0   ;;  %s1540_s24 = smov 0  }
   0x8 LB: > { %s1555_s25 = sadd.s32 4294967295, %s1486_s24   ;;  %s1033_s26 = sadd.s32 4294967294, %s1486_s24   ;;  %s1486_s24 = sphi %s1540_s24, %s1928_s24   ;;  %s1482_s23 = sphi %s1538_s23, %s1927_s23   ;;  %s1478_s22 = sphi %s1536_s22, %s1926_s22   ;;  %s1474_s21 = sphi %s1534_s21, %s1925_s21  }
   0x9   : > { %p47_p0 = scmp.ne.s32.totalorder %s1478_s22, %s1474_s21  ;;  %p1909_p1 = scmp.eq.s32.totalorder %s1555_s25, 0 }
   0xa   : > { %p161_p3 = scmp.eq.s32.totalorder %s1033_s26, 1  ;;  %p1034_p5 = scmp.ge.s32.totalorder %s1486_s24, 1 }
   0xb   : > { %p1564_p4 = por %p1909_p1, %p47_p0  ;;  %p194_p7 = scmp.lt.s32.totalorder %s1486_s24, 3 }
   0xc   : > { %p1569_p6 = por %p161_p3, %p47_p0  ;;  %s1488_s30 = smov [#allocation5]  }
   0xd   : > { %s1912_s27 = scalar_select %p1564_p4, 1, 0 }
   0xe   : > { %s1913_s28 = scalar_select %p1569_p6, 1, 0 }
   0xf   : > { %p1574_p8 = pnand %p1034_p5, %p194_p7  ;;  %s206_s7 = sshll.u32 %s1488_s30, 4  ;;  %s1578_s7 = int_to_ptr.vmem [resolvable:$true] %s206_s7 }
  0x10   : > { %s1489_s9 = smov [#allocation7]   ;;  %s1298_s13 = scalar_lea.hbm %s1903_s1, 1024 }
  0x11   : > { %p1202_p9 = pneg %p1574_p8  ;;  %s222_s10 = sshll.u32 %s1489_s9, 4  ;;  %s1589_s10 = int_to_ptr.vmem [resolvable:$true] %s222_s10 }
  0x12   : > { %p1299_p12 = scmp.ne.s32.totalorder %s1903_s1, %s1298_s13  ;;  %p1305_p5 = scmp.lt.u32.totalorder %s1298_s13, %s1903_s1 }
  0x13   : > { %p1585_p11 = pnand %p1202_p9, %p1909_p1 }
  0x15   : > { %p1300_p13 = pneg %p1585_p11 }
  0x17   : > { %p1301_p0 = pnand %p1300_p13, %p1299_p12 }
  0x19   : > { %p1302_p3 = pneg %p1301_p0 }
  0x1b   : > { %p1307_p7 = pnand %p1305_p5, %p1302_p3 }
  0x1d   : > { %1310 = shalt.err (!%p1307_p7)
}
  0x1e   : > { %s1311_s18 = scalar_lea.vmem %s1578_s7, 1024  ;;  %p1319_p2 = scmp.lt.s32.totalorder %s1578_s7, %s1578_s7 }
  0x1f   : > { %p1312_p9 = scmp.ne.s32.totalorder %s1578_s7, %s1311_s18  ;;  %p1320_p12 = scmp.lt.s32.totalorder %s1311_s18, %s1311_s18 }
  0x21   : > { %p1314_p10 = pnand %p1312_p9, %p1300_p13  ;;  %p1321_p0 = por %p1320_p12, %p1319_p2 }
  0x23   : > { %p1315_p1 = pneg %p1314_p10 }
  0x25   : > { %p1322_p6 = pnand %p1321_p0, %p1315_p1 }
  0x27   : > { %1325 = shalt.err (!%p1322_p6)
}
  0x28   : > { %s1490_s19 = smov 64   ;;  %s1491_s20 = smov 4  }
  0x29   : > { %1205 = dma.hbm_to_vmem [thread:$0]  (!%p1585_p11), %s1903_s1, 1024, %s1578_s7, [#allocation6], %s1490_s19, %s1490_s19, %s1491_s20  }
  0x2a   : > { %s1326_s12 = scalar_lea.hbm %s1905_s3, 1024 }
  0x2b   : > { %p1327_p1 = scmp.ne.s32.totalorder %s1905_s3, %s1326_s12  ;;  %p1333_p10 = scmp.lt.u32.totalorder %s1326_s12, %s1905_s3 }
  0x2d   : > { %p1329_p2 = pnand %p1327_p1, %p1300_p13 }
  0x2f   : > { %p1330_p6 = pneg %p1329_p2 }
  0x31   : > { %p1335_p3 = pnand %p1333_p10, %p1330_p6 }
  0x33   : > { %1338 = shalt.err (!%p1335_p3)
}
  0x34   : > { %s1339_s7 = scalar_lea.vmem %s1589_s10, 1024  ;;  %p1347_p12 = scmp.lt.s32.totalorder %s1589_s10, %s1589_s10 }
  0x35   : > { %p1340_p5 = scmp.ne.s32.totalorder %s1589_s10, %s1339_s7  ;;  %p1348_p0 = scmp.lt.s32.totalorder %s1339_s7, %s1339_s7 }
  0x37   : > { %p1342_p7 = pnand %p1340_p5, %p1300_p13  ;;  %p1349_p1 = por %p1348_p0, %p1347_p12 }
  0x39   : > { %p1343_p9 = pneg %p1342_p7 }
  0x3b   : > { %p1350_p2 = pnand %p1349_p1, %p1343_p9 }
  0x3d   : > { %1353 = shalt.err (!%p1350_p2)
}
  0x3e   : > { %1208 = dma.hbm_to_vmem [thread:$0]  (!%p1585_p11), %s1905_s3, 1024, %s1589_s10, [#allocation6], %s1490_s19, %s1490_s19, %s1491_s20  }
  0x3f   : > { %s1650_s8 = sadd.s32 1, %s1486_s24   ;;  %s34_s26 = sadd.s32 1, %s1482_s23 }
  0x40   : > { %s31_s30 = ssub.s32 %s1486_s24, %s1650_s8  ;;  %p41_p13 = scmp.ne.s32.totalorder %s1482_s23, %s1478_s22 }
  0x41   : > { %p32_p6 = scmp.eq.s32.totalorder %s31_s30, 0  ;;  %p42_p10 = scmp.eq.s32.totalorder %s1486_s24, 0 }
  0x42   : > { %p1916_p3 = scmp.eq.s32.totalorder %s1555_s25, 1  ;;  %p1222_p7 = scmp.lt.s32.totalorder %s1486_s24, 2 }
  0x43   : > { %s1666_s11 = scalar_select %p32_p6, %s1482_s23, %s34_s26  }
  0x44   : > { %p1660_p5 = por %p1916_p3, %p41_p13  ;;  %p43_p9 = por %p42_p10, %p41_p13 }
  0x45   : > { %s239_s12 = sand.u32 1, %s1482_s23   ;;  %s1085_s10 = sshll.u32 %s1486_s24, 11 }
  0x46   : > { %s1917_s9 = scalar_select %p1660_p5, 1, 0 }
  0x47   : > { %s1038_s13 = sshll.u32 %s239_s12, 7  ;;  %s1673_s16 = scalar_lea.hbm %s1902_s0, %s1085_s10 }
  0x48   : > { %s243_s7 = scalar_lea.vmem [#allocation2], %s1038_s13  ;;  %p1677_p11 = pnand %p1222_p7, %p43_p9 }
  0x49   : > { %s250_s17 = sshll.u32 %s243_s7, 4  ;;  %s1681_s26 = scalar_lea.sflag [#allocation3], %s239_s12  ;;  %s1675_s17 = int_to_ptr.vmem [resolvable:$true] %s250_s17 }
  0x4a   : > { %s1354_s30 = scalar_lea.hbm %s1673_s16, 2048  ;;  %p1356_p0 = pneg %p1677_p11 }
  0x4b   : > { %p1355_p12 = scmp.ne.s32.totalorder %s1673_s16, %s1354_s30  ;;  %s1359_s14 = scalar_lea.hbm %s1902_s0, 4096 }
  0x4c   : > { %p1360_p13 = scmp.lt.u32.totalorder %s1673_s16, %s1902_s0  ;;  %p1361_p6 = scmp.lt.u32.totalorder %s1359_s14, %s1354_s30 }
  0x4d   : > { %p1357_p1 = pnand %p1356_p0, %p1355_p12  ;;  %p1363_p3 = scmp.lt.u32.totalorder %s1354_s30, %s1673_s16 }
  0x4e   : > { %p1362_p10 = por %p1361_p6, %p1360_p13 }
  0x4f   : > { %p1358_p2 = pneg %p1357_p1 }
  0x50   : > { %p1364_p7 = por %p1363_p3, %p1362_p10 }
  0x52   : > { %p1365_p9 = pnand %p1364_p7, %p1358_p2 }
  0x54   : > { %1368 = shalt.err (!%p1365_p9)
}
  0x55   : > { %s1369_s12 = scalar_lea.vmem %s1675_s17, 2048  ;;  %s1492_s13 = smov [#allocation2]  }
  0x56   : > { %p1370_p12 = scmp.ne.s32.totalorder %s1675_s17, %s1369_s12  ;;  %s1374_s10 = sshll.u32 %s1492_s13, 4  ;;  %s1375_s10 = int_to_ptr.vmem [resolvable:$false] %s1374_s10 }
  0x57   : > { %s1376_s15 = scalar_lea.vmem %s1375_s10, 4096  ;;  %p1377_p4 = scmp.lt.s32.totalorder %s1675_s17, %s1375_s10 }
  0x58   : > { %p1372_p1 = pnand %p1370_p12, %p1356_p0  ;;  %p1378_p13 = scmp.lt.s32.totalorder %s1376_s15, %s1369_s12 }
  0x5a   : > { %p1373_p5 = pneg %p1372_p1  ;;  %p1379_p6 = por %p1378_p13, %p1377_p4 }
  0x5c   : > { %p1380_p10 = pnand %p1379_p6, %p1373_p5 }
  0x5e   : > { %1383 = shalt.err (!%p1380_p10)
}
  0x5f   : > { %1212 = dma.hbm_to_vmem [thread:$0]  (!%p1677_p11), %s1673_s16, 2048, %s1675_s17, %s1681_s26, %s1490_s19, %s1490_s19, %s1491_s20  }
  0x60   : > { %262 = sbr.rel (%p1574_p8) target bundleno = 665 (0x299), region = 40  ;;  %s1715_s30 = sand.u32 (!%p1574_p8), 1, %s1478_s22  }
  0x61   : > { %s1042_s14 = sshll.u32 (!%p1574_p8), %s1715_s30, 7  ;;  %s265_s7 = scalar_lea.sflag (!%p1574_p8), [#allocation3], %s1715_s30 }
  0x62   : > { %s1719_s12 = scalar_lea.vmem (!%p1574_p8), [#allocation2], %s1042_s14  ;;  %p1919_p4 = scmp.ne.s32.totalorder (!%p1574_p8), %s1912_s27, 0 }
  0x67   : > { %1457 = dma.done.wait (%p1919_p4), %s265_s7, 2048  }
  0x68   : > { %1459 = vsyncadd (%p1919_p4), %s265_s7, 4294965248  ;;  %p1920_p5 = scmp.eq.s32.totalorder %s1555_s25, 0 }
  0x6a   : > { %1461 = dma.done.wait (%p1920_p5), [#allocation6], 2048   ;;  %p1921_p8 = pmov %p1920_p5 }
  0x6b   : > { %v1266_v0 = vld [vmem:[#allocation5] sm:$0xff]   ;;  %v1267_v1 = vld [vmem:[#allocation5 + $0x8] sm:$0xff]   ;;  %v1268_v2 = vld [vmem:[#allocation5 + $0x10] sm:$0xff]   ;;  %v1493_v25 = vmov 0.0   ;;  %vm1494_vm0 = vmmov 0   ;;  %s1045_s19 = sshll.u32 %s1715_s30, 8 }
  0x6c   : > { %1463 = vsyncadd (%p1921_p8), [#allocation6], 4294965248  ;;  %1120 = vmatprep.subr.bf16.mxu0 %v1266_v0  ;;  %v1269_v3 = vld [vmem:[#allocation5 + $0x18] sm:$0xff]   ;;  %v1274_v4 = vld [vmem:[%s1719_s12] sm:$0xff]   ;;  %1168 = vmatprep.subr.bf16.mxu1 %v1493_v25  ;;  %s1755_s20 = scalar_lea.vmem [#allocation8], %s1045_s19  ;;  %s1086_s16 = sshll.u32 %s1555_s25, 12 }
  0x6d   : > { %1121 = vmatpush3.bf16.msra.mxu0 %v1266_v0  ;;  %1136 = vmatprep.mubr.bf16.mxu0 %v1274_v4  ;;  %v1270_v5 = vld [vmem:[#allocation5 + $0x20] sm:$0xff]   ;;  %v1271_v6 = vld [vmem:[#allocation5 + $0x28] sm:$0xff]   ;;  %v1272_v7 = vld [vmem:[#allocation5 + $0x30] sm:$0xff]   ;;  %s900_s17 = sshll.u32 %s1755_s20, 4  ;;  %s1822_s13 = scalar_lea.hbm %s1907_s5, %s1086_s16  ;;  %s1824_s17 = int_to_ptr.vmem [resolvable:$true] %s900_s17 }
  0x6e   : > { %1122 = vmatprep.subr.bf16.mxu0 %v1267_v1  ;;  %v1273_v8 = vld [vmem:[#allocation5 + $0x38] sm:$0xff]   ;;  %v1275_v9 = vld [vmem:[%s1719_s12 + $0x8] sm:$0xff]   ;;  %v1276_v10 = vld [vmem:[%s1719_s12 + $0x10] sm:$0xff]   ;;  %1184 = vmatprep.mubr.msk.bf16.mxu1 %vm1494_vm0, %v1493_v25  ;;  %s883_s10 = scalar_lea.sflag [#allocation4], %s1715_s30  ;;  %s1384_s15 = scalar_lea.vmem %s1824_s17, 4096 }
  0x6f   : > { %v1277_v11 = vld [vmem:[%s1719_s12 + $0x18] sm:$0xff]   ;;  %v1278_v12 = vld [vmem:[%s1719_s12 + $0x20] sm:$0xff]   ;;  %v1279_v13 = vld [vmem:[%s1719_s12 + $0x28] sm:$0xff]   ;;  %p1385_p11 = scmp.ne.s32.totalorder %s1824_s17, %s1384_s15  ;;  %p1922_p0 = scmp.ne.s32.totalorder %s1917_s9, 0 }
  0x70   : > { %v1280_v14 = vld [vmem:[%s1719_s12 + $0x30] sm:$0xff]   ;;  %v1281_v15 = vld [vmem:[%s1719_s12 + $0x38] sm:$0xff]   ;;  %v1282_v16 = vld [vmem:[%s1719_s12 + $0x40] sm:$0xff]   ;;  %s1495_s14 = smov [#allocation8]  }
  0x71   : > { %1123 = vmatpush3.bf16.msra.mxu0 %v1267_v1  ;;  %v1283_v17 = vld [vmem:[%s1719_s12 + $0x48] sm:$0xff]   ;;  %v1284_v18 = vld [vmem:[%s1719_s12 + $0x50] sm:$0xff]   ;;  %v1285_v19 = vld [vmem:[%s1719_s12 + $0x58] sm:$0xff]   ;;  %p1386_p2 = pnand %p1385_p11, %p1922_p0  ;;  %s1388_s7 = sshll.u32 %s1495_s14, 4  ;;  %s1389_s7 = int_to_ptr.vmem [resolvable:$false] %s1388_s7 }
  0x72   : > { %1124 = vmatprep.subr.bf16.mxu0 %v1268_v2  ;;  %v1286_v20 = vld [vmem:[%s1719_s12 + $0x60] sm:$0xff]   ;;  %v1287_v21 = vld [vmem:[%s1719_s12 + $0x68] sm:$0xff]   ;;  %v1288_v22 = vld [vmem:[%s1719_s12 + $0x70] sm:$0xff]   ;;  %p1391_p7 = scmp.lt.s32.totalorder %s1824_s17, %s1389_s7 }
  0x73   : > { %v1289_v23 = vld [vmem:[%s1719_s12 + $0x78] sm:$0xff]   ;;  %v1290_v24 = vld [vmem:[#allocation7] sm:$0xff]   ;;  %v1291_v26 = vld [vmem:[#allocation7 + $0x8] sm:$0xff]   ;;  %p1387_p3 = pneg %p1386_p2  ;;  %s1390_s12 = scalar_lea.vmem %s1389_s7, 8192 }
  0x74   : > { %1169 = vmatpush3.bf16.msra.mxu1 %v1290_v24  ;;  %v1292_v27 = vld [vmem:[#allocation7 + $0x10] sm:$0xff]   ;;  %v1293_v28 = vld [vmem:[#allocation7 + $0x18] sm:$0xff]   ;;  %v1294_v29 = vld [vmem:[#allocation7 + $0x20] sm:$0xff]   ;;  %p1392_p9 = scmp.lt.s32.totalorder %s1390_s12, %s1384_s15 }
  0x75   : > { %1125 = vmatpush3.bf16.msra.mxu0 %v1268_v2  ;;  %1170 = vmatprep.subr.bf16.mxu1 %v1493_v25  ;;  %v1295_v30 = vld [vmem:[#allocation7 + $0x28] sm:$0xff]   ;;  %v1296_v31 = vld [vmem:[#allocation7 + $0x30] sm:$0xff]   ;;  %v1297_v32 = vld [vmem:[#allocation7 + $0x38] sm:$0xff]  }
  0x76   : > { %1126 = vmatprep.subr.bf16.mxu0 %v1269_v3  ;;  %v1748_v33 = vld [vmem:[%s1904_s2] ss:$0 sm:$0xff]  ;;  %p1393_p12 = por %p1392_p9, %p1391_p7 }
  0x78   : > { %1171 = vmatpush3.bf16.msra.mxu1 %v1291_v26  ;;  %p1394_p1 = pnand %p1393_p12, %p1387_p3 }
  0x79   : > { %1127 = vmatpush3.bf16.msra.mxu0 %v1269_v3  ;;  %1172 = vmatprep.subr.bf16.mxu1 %v1493_v25 }
  0x7a   : > { %1128 = vmatprep.subr.bf16.mxu0 %v1270_v5 }
  0x7c   : > { %1173 = vmatpush3.bf16.msra.mxu1 %v1292_v27 }
  0x7d   : > { %1129 = vmatpush3.bf16.msra.mxu0 %v1270_v5  ;;  %1174 = vmatprep.subr.bf16.mxu1 %v1493_v25 }
  0x7e   : > { %1130 = vmatprep.subr.bf16.mxu0 %v1271_v6 }
  0x80   : > { %1175 = vmatpush3.bf16.msra.mxu1 %v1293_v28 }
  0x81   : > { %1131 = vmatpush3.bf16.msra.mxu0 %v1271_v6  ;;  %1176 = vmatprep.subr.bf16.mxu1 %v1493_v25 }
  0x82   : > { %1132 = vmatprep.subr.bf16.mxu0 %v1272_v7 }
  0x84   : > { %1177 = vmatpush3.bf16.msra.mxu1 %v1294_v29 }
  0x85   : > { %1133 = vmatpush3.bf16.msra.mxu0 %v1272_v7  ;;  %1178 = vmatprep.subr.bf16.mxu1 %v1493_v25 }
  0x86   : > { %1134 = vmatprep.subr.bf16.mxu0 %v1273_v8 }
  0x88   : > { %1179 = vmatpush3.bf16.msra.mxu1 %v1295_v30 }
  0x89   : > { %1135 = vmatpush3.bf16.msra.mxu0 %v1273_v8  ;;  %1180 = vmatprep.subr.bf16.mxu1 %v1493_v25 }
  0x8c   : > { %1137 = vmatmul.mubr.bf16.vlgmr.msra.gmra.mrb[0].mxu0 %v1275_v9  ;;  %1181 = vmatpush3.bf16.msra.mxu1 %v1296_v31 }
  0x8d   : > { %1140 = vmatprep.mubr.bf16.mxu0 %v1276_v10  ;;  %1182 = vmatprep.subr.bf16.mxu1 %v1493_v25 }
  0x90   : > { %1183 = vmatpush3.bf16.msra.mxu1 %v1297_v32 }
  0x94   : > { %1141 = vmatmul.mubr.bf16.gmra.mrb[4].mxu0 %v1277_v11 }
  0x95   : > { %1144 = vmatprep.mubr.bf16.mxu0 %v1278_v12 }
  0x9c   : > { %1145 = vmatmul.mubr.bf16.gmra.mrb[8].mxu0 %v1279_v13 }
  0x9d   : > { %1148 = vmatprep.mubr.bf16.mxu0 %v1280_v14 }
  0xa4   : > { %1149 = vmatmul.mubr.bf16.gmra.mrb[12].mxu0 %v1281_v15 }
  0xa5   : > { %1152 = vmatprep.mubr.bf16.mxu0 %v1282_v16 }
  0xac   : > { %1153 = vmatmul.mubr.bf16.gmra.mrb[16].mxu0 %v1283_v17 }
  0xad   : > { %1156 = vmatprep.mubr.bf16.mxu0 %v1284_v18 }
  0xb4   : > { %1157 = vmatmul.mubr.bf16.gmra.mrb[20].mxu0 %v1285_v19 }
  0xb5   : > { %1160 = vmatprep.mubr.bf16.mxu0 %v1286_v20 }
  0xbc   : > { %1161 = vmatmul.mubr.bf16.gmra.mrb[24].mxu0 %v1287_v21 }
  0xbd   : > { %1164 = vmatprep.mubr.bf16.mxu0 %v1288_v22 }
  0xc4   : > { %1165 = vmatmul.mubr.bf16.gmra.mrb[28].mxu0 %v1289_v23 }
 0x15f   : > { %v1138_v34 = vpop.f32.mrb[0].mxu0 }
 0x160   : > { %v554_v35 = vadd.f32 %v1138_v34, %v1748_v33  ;;  %v545_v36 = vpop.f32.mrb[1].mxu0 }
 0x161   : > { %v546_v37 = vadd.f32 %v1748_v33, %v545_v36  ;;  %v1139_v38 = vpop.f32.mrb[2].mxu0 }
 0x162   : > { %v674_v39 = vmax.f32 %v554_v35, 0.0  ;;  %v557_v40 = vadd.f32 %v1139_v38, %v1748_v33  ;;  %v548_v41 = vpop.f32.mrb[3].mxu0 }
 0x163   : > { %v672_v42 = vmax.f32 %v546_v37, 0.0  ;;  %v549_v43 = vadd.f32 %v1748_v33, %v548_v41 }
 0x164   : > { %706 = vst [vmem:[%s1755_s20 + $0x10] sm:$0xff] %v674_v39  ;;  %v675_v44 = vmax.f32 %v557_v40, 0.0 }
 0x165   : > { %704 = vst [vmem:[%s1755_s20] sm:$0xff] %v672_v42  ;;  %v673_v45 = vmax.f32 %v549_v43, 0.0 }
 0x166   : > { %707 = vst [vmem:[%s1755_s20 + $0x18] sm:$0xff] %v675_v44 }
 0x167   : > { %705 = vst [vmem:[%s1755_s20 + $0x8] sm:$0xff] %v673_v45  ;;  %v736_v46 = vadd.f32 %v673_v45, %v672_v42  ;;  %v1142_v47 = vpop.f32.mrb[4].mxu0 }
 0x168   : > { %v570_v48 = vadd.f32 %v1142_v47, %v1748_v33  ;;  %v561_v49 = vpop.f32.mrb[5].mxu0 }
 0x169   : > { %v737_v50 = vadd.f32 %v736_v46, %v674_v39  ;;  %v562_v51 = vadd.f32 %v1748_v33, %v561_v49  ;;  %v1143_v52 = vpop.f32.mrb[6].mxu0 }
 0x16a   : > { %v678_v53 = vmax.f32 %v570_v48, 0.0  ;;  %v573_v54 = vadd.f32 %v1143_v52, %v1748_v33  ;;  %v564_v55 = vpop.f32.mrb[7].mxu0 }
 0x16b   : > { %v676_v56 = vmax.f32 %v562_v51, 0.0  ;;  %v738_v57 = vadd.f32 %v737_v50, %v675_v44  ;;  %v565_v58 = vadd.f32 %v1748_v33, %v564_v55 }
 0x16c   : > { %710 = vst [vmem:[%s1755_s20 + $0x30] sm:$0xff] %v678_v53  ;;  %v679_v59 = vmax.f32 %v573_v54, 0.0 }
 0x16d   : > { %708 = vst [vmem:[%s1755_s20 + $0x20] sm:$0xff] %v676_v56  ;;  %v739_v60 = vadd.f32 %v738_v57, %v676_v56  ;;  %v677_v61 = vmax.f32 %v565_v58, 0.0 }
 0x16e   : > { %711 = vst [vmem:[%s1755_s20 + $0x38] sm:$0xff] %v679_v59 }
 0x16f   : > { %709 = vst [vmem:[%s1755_s20 + $0x28] sm:$0xff] %v677_v61  ;;  %v740_v62 = vadd.f32 %v739_v60, %v677_v61  ;;  %v1146_v63 = vpop.f32.mrb[8].mxu0 }
 0x170   : > { %v586_v0 = vadd.f32 %v1146_v63, %v1748_v33  ;;  %v577_v1 = vpop.f32.mrb[9].mxu0 }
 0x171   : > { %v741_v2 = vadd.f32 %v740_v62, %v678_v53  ;;  %v578_v3 = vadd.f32 %v1748_v33, %v577_v1  ;;  %v1147_v4 = vpop.f32.mrb[10].mxu0 }
 0x172   : > { %v682_v5 = vmax.f32 %v586_v0, 0.0  ;;  %v589_v6 = vadd.f32 %v1147_v4, %v1748_v33  ;;  %v580_v7 = vpop.f32.mrb[11].mxu0 }
 0x173   : > { %v680_v8 = vmax.f32 %v578_v3, 0.0  ;;  %v742_v9 = vadd.f32 %v741_v2, %v679_v59  ;;  %v581_v10 = vadd.f32 %v1748_v33, %v580_v7 }
 0x174   : > { %714 = vst [vmem:[%s1755_s20 + $0x50] sm:$0xff] %v682_v5  ;;  %v683_v11 = vmax.f32 %v589_v6, 0.0 }
 0x175   : > { %712 = vst [vmem:[%s1755_s20 + $0x40] sm:$0xff] %v680_v8  ;;  %v743_v12 = vadd.f32 %v742_v9, %v680_v8  ;;  %v681_v13 = vmax.f32 %v581_v10, 0.0 }
 0x176   : > { %715 = vst [vmem:[%s1755_s20 + $0x58] sm:$0xff] %v683_v11 }
 0x177   : > { %713 = vst [vmem:[%s1755_s20 + $0x48] sm:$0xff] %v681_v13  ;;  %v744_v14 = vadd.f32 %v743_v12, %v681_v13  ;;  %v1150_v15 = vpop.f32.mrb[12].mxu0 }
 0x178   : > { %v602_v16 = vadd.f32 %v1150_v15, %v1748_v33  ;;  %v593_v17 = vpop.f32.mrb[13].mxu0 }
 0x179   : > { %v745_v18 = vadd.f32 %v744_v14, %v682_v5  ;;  %v594_v19 = vadd.f32 %v1748_v33, %v593_v17  ;;  %v1151_v20 = vpop.f32.mrb[14].mxu0 }
 0x17a   : > { %v686_v21 = vmax.f32 %v602_v16, 0.0  ;;  %v605_v22 = vadd.f32 %v1151_v20, %v1748_v33  ;;  %v596_v23 = vpop.f32.mrb[15].mxu0 }
 0x17b   : > { %v684_v24 = vmax.f32 %v594_v19, 0.0  ;;  %v746_v25 = vadd.f32 %v745_v18, %v683_v11  ;;  %v597_v26 = vadd.f32 %v1748_v33, %v596_v23 }
 0x17c   : > { %718 = vst [vmem:[%s1755_s20 + $0x70] sm:$0xff] %v686_v21  ;;  %v687_v27 = vmax.f32 %v605_v22, 0.0 }
 0x17d   : > { %716 = vst [vmem:[%s1755_s20 + $0x60] sm:$0xff] %v684_v24  ;;  %v747_v28 = vadd.f32 %v746_v25, %v684_v24  ;;  %v685_v29 = vmax.f32 %v597_v26, 0.0 }
 0x17e   : > { %719 = vst [vmem:[%s1755_s20 + $0x78] sm:$0xff] %v687_v27 }
 0x17f   : > { %717 = vst [vmem:[%s1755_s20 + $0x68] sm:$0xff] %v685_v29  ;;  %v748_v30 = vadd.f32 %v747_v28, %v685_v29  ;;  %v1154_v31 = vpop.f32.mrb[16].mxu0 }
 0x180   : > { %v618_v32 = vadd.f32 %v1154_v31, %v1748_v33  ;;  %v609_v34 = vpop.f32.mrb[17].mxu0 }
 0x181   : > { %v749_v35 = vadd.f32 %v748_v30, %v686_v21  ;;  %v610_v36 = vadd.f32 %v1748_v33, %v609_v34  ;;  %v1155_v37 = vpop.f32.mrb[18].mxu0 }
 0x182   : > { %v690_v38 = vmax.f32 %v618_v32, 0.0  ;;  %v621_v39 = vadd.f32 %v1155_v37, %v1748_v33  ;;  %v612_v40 = vpop.f32.mrb[19].mxu0 }
 0x183   : > { %v688_v41 = vmax.f32 %v610_v36, 0.0  ;;  %v750_v42 = vadd.f32 %v749_v35, %v687_v27  ;;  %v613_v43 = vadd.f32 %v1748_v33, %v612_v40 }
 0x184   : > { %722 = vst [vmem:[%s1755_s20 + $0x90] sm:$0xff] %v690_v38  ;;  %v691_v44 = vmax.f32 %v621_v39, 0.0 }
 0x185   : > { %720 = vst [vmem:[%s1755_s20 + $0x80] sm:$0xff] %v688_v41  ;;  %v751_v45 = vadd.f32 %v750_v42, %v688_v41  ;;  %v689_v46 = vmax.f32 %v613_v43, 0.0 }
 0x186   : > { %723 = vst [vmem:[%s1755_s20 + $0x98] sm:$0xff] %v691_v44 }
 0x187   : > { %721 = vst [vmem:[%s1755_s20 + $0x88] sm:$0xff] %v689_v46  ;;  %v752_v47 = vadd.f32 %v751_v45, %v689_v46  ;;  %v1158_v48 = vpop.f32.mrb[20].mxu0 }
 0x188   : > { %v634_v49 = vadd.f32 %v1158_v48, %v1748_v33  ;;  %v625_v50 = vpop.f32.mrb[21].mxu0 }
 0x189   : > { %v753_v51 = vadd.f32 %v752_v47, %v690_v38  ;;  %v626_v52 = vadd.f32 %v1748_v33, %v625_v50  ;;  %v1159_v53 = vpop.f32.mrb[22].mxu0 }
 0x18a   : > { %v694_v54 = vmax.f32 %v634_v49, 0.0  ;;  %v637_v55 = vadd.f32 %v1159_v53, %v1748_v33  ;;  %v628_v56 = vpop.f32.mrb[23].mxu0 }
 0x18b   : > { %v692_v57 = vmax.f32 %v626_v52, 0.0  ;;  %v754_v58 = vadd.f32 %v753_v51, %v691_v44  ;;  %v629_v59 = vadd.f32 %v1748_v33, %v628_v56 }
 0x18c   : > { %726 = vst [vmem:[%s1755_s20 + $0xb0] sm:$0xff] %v694_v54  ;;  %v695_v60 = vmax.f32 %v637_v55, 0.0 }
 0x18d   : > { %724 = vst [vmem:[%s1755_s20 + $0xa0] sm:$0xff] %v692_v57  ;;  %v755_v61 = vadd.f32 %v754_v58, %v692_v57  ;;  %v693_v62 = vmax.f32 %v629_v59, 0.0 }
 0x18e   : > { %727 = vst [vmem:[%s1755_s20 + $0xb8] sm:$0xff] %v695_v60 }
 0x18f   : > { %725 = vst [vmem:[%s1755_s20 + $0xa8] sm:$0xff] %v693_v62  ;;  %v756_v63 = vadd.f32 %v755_v61, %v693_v62  ;;  %v1162_v0 = vpop.f32.mrb[24].mxu0 }
 0x190   : > { %v650_v1 = vadd.f32 %v1162_v0, %v1748_v33  ;;  %v641_v2 = vpop.f32.mrb[25].mxu0 }
 0x191   : > { %v757_v3 = vadd.f32 %v756_v63, %v694_v54  ;;  %v642_v4 = vadd.f32 %v1748_v33, %v641_v2  ;;  %v1163_v5 = vpop.f32.mrb[26].mxu0 }
 0x192   : > { %v698_v6 = vmax.f32 %v650_v1, 0.0  ;;  %v653_v7 = vadd.f32 %v1163_v5, %v1748_v33  ;;  %v644_v8 = vpop.f32.mrb[27].mxu0 }
 0x193   : > { %v696_v9 = vmax.f32 %v642_v4, 0.0  ;;  %v758_v10 = vadd.f32 %v757_v3, %v695_v60  ;;  %v645_v11 = vadd.f32 %v1748_v33, %v644_v8 }
 0x194   : > { %730 = vst [vmem:[%s1755_s20 + $0xd0] sm:$0xff] %v698_v6  ;;  %v699_v12 = vmax.f32 %v653_v7, 0.0 }
 0x195   : > { %728 = vst [vmem:[%s1755_s20 + $0xc0] sm:$0xff] %v696_v9  ;;  %v759_v13 = vadd.f32 %v758_v10, %v696_v9  ;;  %v697_v14 = vmax.f32 %v645_v11, 0.0 }
 0x196   : > { %731 = vst [vmem:[%s1755_s20 + $0xd8] sm:$0xff] %v699_v12 }
 0x197   : > { %729 = vst [vmem:[%s1755_s20 + $0xc8] sm:$0xff] %v697_v14  ;;  %v760_v15 = vadd.f32 %v759_v13, %v697_v14  ;;  %v1166_v16 = vpop.f32.mrb[28].mxu0 }
 0x198   : > { %v666_v17 = vadd.f32 %v1166_v16, %v1748_v33  ;;  %v657_v18 = vpop.f32.mrb[29].mxu0 }
 0x199   : > { %v761_v19 = vadd.f32 %v760_v15, %v698_v6  ;;  %v658_v20 = vadd.f32 %v1748_v33, %v657_v18  ;;  %v1167_v21 = vpop.f32.mrb[30].mxu0 }
 0x19a   : > { %v702_v22 = vmax.f32 %v666_v17, 0.0  ;;  %v669_v23 = vadd.f32 %v1167_v21, %v1748_v33  ;;  %v660_v24 = vpop.f32.mrb[31].mxu0 }
 0x19b   : > { %v700_v25 = vmax.f32 %v658_v20, 0.0  ;;  %v762_v26 = vadd.f32 %v761_v19, %v699_v12  ;;  %v661_v27 = vadd.f32 %v1748_v33, %v660_v24 }
 0x19c   : > { %734 = vst [vmem:[%s1755_s20 + $0xf0] sm:$0xff] %v702_v22  ;;  %v703_v28 = vmax.f32 %v669_v23, 0.0 }
 0x19d   : > { %732 = vst [vmem:[%s1755_s20 + $0xe0] sm:$0xff] %v700_v25  ;;  %v763_v29 = vadd.f32 %v762_v26, %v700_v25  ;;  %v701_v30 = vmax.f32 %v661_v27, 0.0 }
 0x19e   : > { %735 = vst [vmem:[%s1755_s20 + $0xf8] sm:$0xff] %v703_v28 }
 0x19f   : > { %733 = vst [vmem:[%s1755_s20 + $0xe8] sm:$0xff] %v701_v30  ;;  %v764_v31 = vadd.f32 %v763_v29, %v701_v30 }
 0x1a1   : > { %v765_v32 = vadd.f32 %v764_v31, %v702_v22 }
 0x1a3   : > { %v766_v34 = vadd.f32 %v765_v32, %v703_v28 }
 0x1a5   : > { %v767_v35 = vrot.slane %v766_v34, 4 }
 0x1a7   : > { %v768_v36 = vadd.f32 %v767_v35, %v766_v34 }
 0x1a9   : > { %v769_v37 = vrot.slane %v768_v36, 2 }
 0x1ab   : > { %v770_v38 = vadd.f32 %v769_v37, %v768_v36 }
 0x1ad   : > { %v771_v39 = vrot.slane %v770_v38, 1 }
 0x1af   : > { %v772_v33 = vadd.f32 %v771_v39, %v770_v38 }
 0x1b1   : > { %v774_v40 = vmul.f32 0.00390625, %v772_v33 }
 0x1b3   : > { %v775_v41 = vpack.c.bf16 %v774_v40, %v774_v40 }
 0x1b5   : > { %1185 = vmatmul.mubr.bf16.vlgmr.msra.gmra.mrb[0].mxu1 %v775_v41 }
 0x1b6   : > { %1397 = shalt.err (!%p1394_p1)
}
 0x1b7   : > { %s1398_s27 = scalar_lea.hbm %s1822_s13, 4096  ;;  %s1402_s20 = scalar_lea.hbm %s1907_s5, 8192 }
 0x1b8   : > { %p1399_p13 = scmp.ne.s32.totalorder %s1822_s13, %s1398_s27  ;;  %p1403_p4 = scmp.lt.u32.totalorder %s1822_s13, %s1907_s5 }
 0x1b9   : > { %p1404_p5 = scmp.lt.u32.totalorder %s1402_s20, %s1398_s27  ;;  %p1406_p11 = scmp.lt.u32.totalorder %s1398_s27, %s1822_s13 }
 0x1ba   : > { %p1400_p6 = pnand %p1399_p13, %p1922_p0 }
 0x1bb   : > { %p1405_p8 = por %p1404_p5, %p1403_p4 }
 0x1bc   : > { %p1401_p10 = pneg %p1400_p6 }
 0x1bd   : > { %p1407_p2 = por %p1406_p11, %p1405_p8 }
 0x1bf   : > { %p1408_p3 = pnand %p1407_p2, %p1401_p10 }
 0x1c1   : > { %1411 = shalt.err (!%p1408_p3)
}
 0x1c2   : > { %s1496_s26 = smov 128   ;;  %s1497_s15 = smov 8   ;;  %v792_v42 = vld [vmem:[%s1906_s4] sm:$0x1] }
 0x1c3   : > { %1198 = dma.vmem_to_hbm [thread:$0]  (%p1922_p0), %s1824_s17, 4096, %s1822_s13, %s883_s10, %s1496_s26, %s1496_s26, %s1497_s15  }
 0x1c4   : > { %s1082_s12 = sshll.u32 %s1555_s25, 4  ;;  %s308_s27 = scalar_lea.vmem [#allocation9], %s1715_s30 }
 0x1c5   : > { %s916_s29 = sshll.u32 %s308_s27, 4  ;;  %s1858_s16 = scalar_lea.hbm %s1908_s6, %s1082_s12  ;;  %s1860_s29 = int_to_ptr.vmem [resolvable:$true] %s916_s29 }
 0x1c6   : > { %s888_s17 = scalar_lea.sflag [#allocation10], %s1715_s30  ;;  %s1412_s25 = scalar_lea.vmem %s1860_s29, 16 }
 0x1c7   : > { %p1413_p7 = scmp.ne.s32.totalorder %s1860_s29, %s1412_s25  ;;  %s1498_s13 = smov [#allocation9]  }
 0x1c8   : > { %s1416_s10 = sshll.u32 %s1498_s13, 4  ;;  %s1417_s10 = int_to_ptr.vmem [resolvable:$false] %s1416_s10 }
 0x1c9   : > { %p1414_p9 = pnand %p1413_p7, %p1922_p0  ;;  %s1418_s18 = scalar_lea.vmem %s1417_s10, 32 }
 0x1ca   : > { %p1419_p1 = scmp.lt.s32.totalorder %s1860_s29, %s1417_s10  ;;  %p1420_p13 = scmp.lt.s32.totalorder %s1418_s18, %s1412_s25 }
 0x1cb   : > { %p1415_p12 = pneg %p1414_p9 }
 0x1cc   : > { %p1421_p6 = por %p1420_p13, %p1419_p1 }
 0x1ce   : > { %p1422_p10 = pnand %p1421_p6, %p1415_p12 }
 0x288   : > { %v875_v43 = vpop.f32.mrb[0].mxu1 }
 0x289   : > { %v876_v44 = vadd.f32 %v875_v43, %v792_v42  ;;  %v1186_v45 = vpop.f32.mrb[1].mxu1 }
 0x28a   : > { %v878_v46 = vpop.f32.mrb[2].mxu1 }
 0x28b   : > { %881 = vst [vmem:[%s308_s27] sm:$0x1] %v876_v44  ;;  %v1187_v47 = vpop.f32.mrb[3].mxu1 }
 0x28c   : > { %1425 = shalt.err (!%p1422_p10)
}
 0x28d   : > { %s1426_s30 = scalar_lea.hbm %s1858_s16, 16  ;;  %s1430_s14 = scalar_lea.hbm %s1908_s6, 32 }
 0x28e   : > { %p1427_p4 = scmp.ne.s32.totalorder %s1858_s16, %s1426_s30  ;;  %p1431_p11 = scmp.lt.u32.totalorder %s1858_s16, %s1908_s6 }
 0x28f   : > { %p1432_p2 = scmp.lt.u32.totalorder %s1430_s14, %s1426_s30  ;;  %p1434_p7 = scmp.lt.u32.totalorder %s1426_s30, %s1858_s16 }
 0x290   : > { %p1428_p5 = pnand %p1427_p4, %p1922_p0 }
 0x291   : > { %p1433_p3 = por %p1432_p2, %p1431_p11 }
 0x292   : > { %p1429_p8 = pneg %p1428_p5 }
 0x293   : > { %p1435_p9 = por %p1434_p7, %p1433_p3 }
 0x295   : > { %p1436_p12 = pnand %p1435_p9, %p1429_p8 }
 0x297   : > { %1439 = shalt.err (!%p1436_p12)
}
 0x298   : > { %1199 = dma.vmem_to_hbm [thread:$0]  (%p1922_p0), %s1860_s29, 16, %s1858_s16, %s888_s17  }
 0x299 PF: > { %s928_s27 = sand.u32 1, %s1474_s21   ;;  %p1923_p1 = scmp.ne.s32.totalorder %s1913_s28, 0 }
 0x29a   : > { %p1924_p13 = scmp.ge.s32.totalorder %s1486_s24, 2  ;;  %s929_s19 = scalar_lea.sflag [#allocation4], %s928_s27 }
 0x29c   : > { %p1214_p6 = pnand %p1924_p13, %p1923_p1 }
 0x29e   : > { %1465 = dma.done.wait (!%p1214_p6), %s929_s19, 4096  }
 0x29f   : > { %1467 = vsyncadd (!%p1214_p6), %s929_s19, 4294963200  ;;  %s938_s20 = scalar_lea.sflag [#allocation10], %s928_s27 }
 0x2a0   : > { %1469 = dma.done.wait (!%p1214_p6), %s938_s20, 16  }
 0x2a1   : > { %1471 = vsyncadd (!%p1214_p6), %s938_s20, 4294967280  ;;  %p24_p0 = scmp.ge.s32.totalorder %s1650_s8, 4   ;;  %s1925_s21 = smov %s1478_s22 }
 0x2a2   : > { %s1926_s22 = smov %s1482_s23  ;;  %s1927_s23 = smov %s1666_s11 }
 0x2a3   : > { %s1928_s24 = smov %s1650_s8  ;;  %26 = sbr.rel (!%p24_p0) target bundleno = 8 (0x8), region = 110 }
 0x2aa   :  { %942 = vsyncpa [#allocation3], 1 }
 0x2ab   :  { %944 = vsyncpa [#allocation3 + $0x1], 1 }
 0x2ac   :  { %945 = vsyncpa [#allocation6], 1 }
 0x2ad   :  { %946 = vsyncpa [#allocation4], 1 }
 0x2ae   :  { %948 = vsyncpa [#allocation4 + $0x1], 1 }
 0x2af   :  { %949 = vsyncpa [#allocation10], 1 }
 0x2b0   :  { %951 = vsyncpa [#allocation10 + $0x1], 1 }

</bundles_post_ra>
